<compile_context>
chip_gen: v7x
topology: tpu7x:2x2x1
jax: 0.10.0
libtpu: 0.0.40
codegen_flags: <defaults>
</compile_context>

<pallas_src>
import math

import jax
import jax.numpy as jnp
from jax.experimental import pallas as pl
from jax.experimental.pallas import tpu as pltpu


# ----------------------------------------------------------------------------
# Kernel: B_blk batch samples per grid step.
# ----------------------------------------------------------------------------
def _se_kernel(x_ref, w1t_ref, b1_ref, w2t_ref, b2_ref, o_ref):
    x = x_ref[...]                                   # (B, C, HW) native dtype

    # Global average pool over the flattened spatial axis.  The 1/HW scale is
    # folded into w1t host-side, so a plain sum suffices.  Accumulate in f32.
    s = jnp.sum(x, axis=-1, dtype=jnp.float32)       # (B, C)

    # fc1 (1x1 conv C -> C//r) + ReLU, f32 accumulation on the MXU.
    h = jnp.dot(s, w1t_ref[...], preferred_element_type=jnp.float32)
    h = jnp.maximum(h + b1_ref[...], 0.0)            # (B, Cr)

    # fc2 (1x1 conv C//r -> C) + sigmoid (exp lands on the EUP slot).
    z = jnp.dot(h, w2t_ref[...], preferred_element_type=jnp.float32)
    g = jax.nn.sigmoid(z + b2_ref[...])              # (B, C) f32

    # Channel-wise rescale (broadcast over the lane axis), store native dtype.
    o_ref[...] = x * g[:, :, None].astype(x.dtype)


# ----------------------------------------------------------------------------
# Batch-block heuristic: biggest block that fits a conservative VMEM budget,
# while keeping >= 2 grid steps when N > 1 so both v7x TensorCores get work.
# ----------------------------------------------------------------------------
def _pick_batch_block(n, c, hw, itemsize, vmem_budget=8 * 1024 * 1024):
    per_sample = c * hw * itemsize
    # input + output, each double-buffered by the pipeline -> 4x per sample.
    b = max(1, vmem_budget // (4 * per_sample))
    b = min(b, n)
    if n > 1:
        b = min(b, -(-n // 2))  # ceil(n / 2): at least two grid steps
    return int(b)


# ----------------------------------------------------------------------------
# Wrapper: flatten spatial dims, launch one fused pallas_call over the batch.
# Weights follow PyTorch Conv2d(1x1) layout: w1 (Cr, C), b1 (Cr,), w2 (C, Cr),
# b2 (C,).
# ----------------------------------------------------------------------------
def se_forward(x_nchw, w1, b1, w2, b2):
    N, C, H, W = x_nchw.shape
    HW = H * W
    Cr = w1.shape[0]

    x = x_nchw.reshape(N, C, HW)                     # native dtype, no cast

    # Host-side (tiny): fold the 1/HW pooling scale into fc1 and pre-transpose
    # so the kernel does row-major matmuls.
    w1t = (w1.astype(jnp.float32) / HW).T            # (C, Cr)
    w2t = w2.astype(jnp.float32).T                   # (Cr, C)
    b1r = b1.astype(jnp.float32).reshape(1, Cr)
    b2r = b2.astype(jnp.float32).reshape(1, C)

    B_blk = _pick_batch_block(N, C, HW, x.dtype.itemsize)
    grid = (pl.cdiv(N, B_blk),)

    out = pl.pallas_call(
        _se_kernel,
        out_shape=jax.ShapeDtypeStruct((N, C, HW), x.dtype),
        grid_spec=pltpu.PrefetchScalarGridSpec(
            num_scalar_prefetch=0,
            grid=grid,
            in_specs=[
                pl.BlockSpec((B_blk, C, HW), lambda n: (n, 0, 0)),  # x
                pl.BlockSpec((C, Cr), lambda n: (0, 0)),            # fc1 W^T/HW
                pl.BlockSpec((1, Cr), lambda n: (0, 0)),            # fc1 bias
                pl.BlockSpec((Cr, C), lambda n: (0, 0)),            # fc2 W^T
                pl.BlockSpec((1, C), lambda n: (0, 0)),             # fc2 bias
            ],
            out_specs=pl.BlockSpec((B_blk, C, HW), lambda n: (n, 0, 0)),
        ),
        compiler_params=pltpu.CompilerParams(
            dimension_semantics=("parallel",),
        ),
    )(x, w1t, b1r, w2t, b2r)
    return out.reshape(N, C, H, W)


# ----------------------------------------------------------------------------
# Deterministic PyTorch-Conv2d-style init (uniform(-1/sqrt(fan_in), ...)).
# ----------------------------------------------------------------------------
def init_params(key, ch, r=4):
    cr = ch // r
    k1, k2, k3, k4 = jax.random.split(key, 4)
    bound1 = 1.0 / math.sqrt(ch)      # fan_in of 1x1 conv = ch
    bound2 = 1.0 / math.sqrt(cr)      # fan_in of 1x1 conv = ch // r
    w1 = jax.random.uniform(k1, (cr, ch), jnp.float32, -bound1, bound1)
    b1 = jax.random.uniform(k2, (cr,), jnp.float32, -bound1, bound1)
    w2 = jax.random.uniform(k3, (ch, cr), jnp.float32, -bound2, bound2)
    b2 = jax.random.uniform(k4, (ch,), jnp.float32, -bound2, bound2)
    return w1, b1, w2, b2


if __name__ == "__main__":
    N, C, H, W = 2, 16, 16, 16
    R = 4

    key = jax.random.PRNGKey(0)
    kx, kp = jax.random.split(key)
    x = jax.random.normal(kx, (N, C, H, W), jnp.float32)
    w1, b1, w2, b2 = init_params(kp, C, R)

    out = jax.jit(se_forward)(x, w1, b1, w2, b2)
    out = jax.block_until_ready(out)

    # Pure-JAX reference for correctness.
    s = jnp.mean(x, axis=(2, 3))                               # (N, C)
    h = jnp.maximum(s @ w1.T + b1, 0.0)                        # (N, C//r)
    g = jax.nn.sigmoid(h @ w2.T + b2)                          # (N, C)
    ref = x * g[:, :, None, None]

    assert out.shape == (N, C, H, W), out.shape
    assert out.dtype == x.dtype, out.dtype
    assert bool(jnp.all(jnp.isfinite(out)))
    assert bool(jnp.allclose(out, ref, atol=1e-5, rtol=1e-5))
    print("KERNEL_OK")
</pallas_src>

<mosaic_0001>
module attributes {stable_mosaic.version = 11 : i64} {
  func.func @_se_kernel(%arg0: i32, %arg1: memref<1x16x256xf32, #tpu.memory_space<vmem>>, %arg2: memref<16x4xf32, #tpu.memory_space<vmem>>, %arg3: memref<1x4xf32, #tpu.memory_space<vmem>>, %arg4: memref<4x16xf32, #tpu.memory_space<vmem>>, %arg5: memref<1x16xf32, #tpu.memory_space<vmem>>, %arg6: memref<1x16x256xf32, #tpu.memory_space<vmem>>) attributes {dimension_semantics = [#tpu.dimension_semantics<parallel>], iteration_bounds = array<i64: 2>, scalar_prefetch = 0 : i64, scratch_operands = 0 : i64, tpu.core_type = #tpu.core_type<tc>, window_params = [{transform_indices = @transform_0, window_bounds = array<i64: 1, 16, 256>}, {pipeline_mode = #tpu.pipeline_mode<synchronous>, transform_indices = @transform_1, window_bounds = array<i64: 16, 4>}, {pipeline_mode = #tpu.pipeline_mode<synchronous>, transform_indices = @transform_2, window_bounds = array<i64: 1, 4>}, {pipeline_mode = #tpu.pipeline_mode<synchronous>, transform_indices = @transform_3, window_bounds = array<i64: 4, 16>}, {pipeline_mode = #tpu.pipeline_mode<synchronous>, transform_indices = @transform_4, window_bounds = array<i64: 1, 16>}, {transform_indices = @transform_5, window_bounds = array<i64: 1, 16, 256>}]} {
    %c0 = arith.constant 0 : index
    %c0_0 = arith.constant 0 : index
    %c0_1 = arith.constant 0 : index
    %0 = vector.load %arg1[%c0, %c0_0, %c0_1] : memref<1x16x256xf32, #tpu.memory_space<vmem>>, vector<1x16x256xf32>
    %cst = arith.constant dense<0.000000e+00> : vector<1x16xf32>
    %1 = vector.multi_reduction <add>, %0, %cst [2] : vector<1x16x256xf32> to vector<1x16xf32>
    %c0_2 = arith.constant 0 : index
    %c0_3 = arith.constant 0 : index
    %2 = vector.load %arg2[%c0_2, %c0_3] : memref<16x4xf32, #tpu.memory_space<vmem>>, vector<16x4xf32>
    %cst_4 = arith.constant dense<0.000000e+00> : vector<1x4xf32>
    %3 = tpu.matmul %1, %2, %cst_4 {dimension_numbers = #tpu.dot_dimension_numbers<[1], [0], [0], [1], [0, 0, 1, 1], [], []>} : vector<1x16xf32>, vector<16x4xf32>, vector<1x4xf32> -> vector<1x4xf32>
    %c0_5 = arith.constant 0 : index
    %c0_6 = arith.constant 0 : index
    %4 = vector.load %arg3[%c0_5, %c0_6] : memref<1x4xf32, #tpu.memory_space<vmem>>, vector<1x4xf32>
    %5 = arith.addf %3, %4 : vector<1x4xf32>
    %cst_7 = arith.constant 0.000000e+00 : f32
    %6 = vector.broadcast %cst_7 : f32 to vector<1x4xf32>
    %7 = arith.maximumf %5, %6 : vector<1x4xf32>
    %c0_8 = arith.constant 0 : index
    %c0_9 = arith.constant 0 : index
    %8 = vector.load %arg4[%c0_8, %c0_9] : memref<4x16xf32, #tpu.memory_space<vmem>>, vector<4x16xf32>
    %cst_10 = arith.constant dense<0.000000e+00> : vector<1x16xf32>
    %9 = tpu.matmul %7, %8, %cst_10 {dimension_numbers = #tpu.dot_dimension_numbers<[1], [0], [0], [1], [0, 0, 1, 1], [], []>} : vector<1x4xf32>, vector<4x16xf32>, vector<1x16xf32> -> vector<1x16xf32>
    %c0_11 = arith.constant 0 : index
    %c0_12 = arith.constant 0 : index
    %10 = vector.load %arg5[%c0_11, %c0_12] : memref<1x16xf32, #tpu.memory_space<vmem>>, vector<1x16xf32>
    %11 = arith.addf %9, %10 : vector<1x16xf32>
    %12 = arith.negf %11 : vector<1x16xf32>
    %13 = math.exp %12 : vector<1x16xf32>
    %cst_13 = arith.constant 1.000000e+00 : f32
    %14 = vector.broadcast %cst_13 : f32 to vector<1x16xf32>
    %15 = arith.addf %14, %13 : vector<1x16xf32>
    %16 = arith.divf %14, %15 : vector<1x16xf32>
    %17 = vector.shape_cast %16 : vector<1x16xf32> to vector<1x16x1xf32>
    %18 = vector.broadcast %17 : vector<1x16x1xf32> to vector<1x16x256xf32>
    %19 = arith.mulf %0, %18 : vector<1x16x256xf32>
    %c0_14 = arith.constant 0 : index
    %c0_15 = arith.constant 0 : index
    %c0_16 = arith.constant 0 : index
    %20 = vector.load %arg6[%c0_14, %c0_15, %c0_16] : memref<1x16x256xf32, #tpu.memory_space<vmem>>, vector<1x16x256xf32>
    tpu.vector_store %arg6[%c0_14, %c0_15, %c0_16], %19 {strides = array<i32>} : memref<1x16x256xf32, #tpu.memory_space<vmem>>, vector<1x16x256xf32>,
    return
  }
  func.func @transform_0(%arg0: i32) -> (i32, i32, i32) {
    %c0_i32 = arith.constant 0 : i32
    %c0_i32_0 = arith.constant 0 : i32
    %c0_i32_1 = arith.constant 0 : i32
    return %arg0, %c0_i32, %c0_i32_0 : i32, i32, i32
  }
  func.func @transform_1(%arg0: i32) -> (i32, i32) {
    %c0_i32 = arith.constant 0 : i32
    %c0_i32_0 = arith.constant 0 : i32
    %c0_i32_1 = arith.constant 0 : i32
    return %c0_i32, %c0_i32_0 : i32, i32
  }
  func.func @transform_2(%arg0: i32) -> (i32, i32) {
    %c0_i32 = arith.constant 0 : i32
    %c0_i32_0 = arith.constant 0 : i32
    %c0_i32_1 = arith.constant 0 : i32
    return %c0_i32, %c0_i32_0 : i32, i32
  }
  func.func @transform_3(%arg0: i32) -> (i32, i32) {
    %c0_i32 = arith.constant 0 : i32
    %c0_i32_0 = arith.constant 0 : i32
    %c0_i32_1 = arith.constant 0 : i32
    return %c0_i32, %c0_i32_0 : i32, i32
  }
  func.func @transform_4(%arg0: i32) -> (i32, i32) {
    %c0_i32 = arith.constant 0 : i32
    %c0_i32_0 = arith.constant 0 : i32
    %c0_i32_1 = arith.constant 0 : i32
    return %c0_i32, %c0_i32_0 : i32, i32
  }
  func.func @transform_5(%arg0: i32) -> (i32, i32, i32) {
    %c0_i32 = arith.constant 0 : i32
    %c0_i32_0 = arith.constant 0 : i32
    %c0_i32_1 = arith.constant 0 : i32
    return %arg0, %c0_i32, %c0_i32_0 : i32, i32, i32
  }
}

</mosaic_0001>

<bundles_post_ra>
// kernel: se_forward.1
= control target key start
LH: loop header
LB: loop body
LE: loop exit
PB: predicated region body
PF: predicated region fallthrough
CT: control target
= control target key end

     0   :  { %s580_s18 = smov 0   ;;  %s619_s0 = inlined_call_operand.vmem [shape: f32[2,16,256], index: 0, kind: input, shape index: {}]   ;;  %s620_s1 = inlined_call_operand.vmem [shape: f32[16,4], index: 1, kind: input, shape index: {}]   ;;  %s621_s2 = inlined_call_operand.vmem [shape: f32[1,4], index: 2, kind: input, shape index: {}]   ;;  %s622_s3 = inlined_call_operand.vmem [shape: f32[4,16], index: 3, kind: input, shape index: {}]   ;;  %s623_s4 = inlined_call_operand.vmem [shape: f32[1,16], index: 4, kind: input, shape index: {}]   ;;  %s624_s5 = inlined_call_operand.vmem [shape: f32[2,16,256], index: 5, kind: output, shape index: {}]  }
   0x1 LB: > { %s487_s19 = sadd.s32 4294967295, %s545_s18   ;;  %p491_p0 = scmp.ge.s32.totalorder %s545_s18, 1  ;;  %s545_s18 = sphi %s580_s18, %s15_s18  }
   0x2   : > { %p187_p1 = scmp.lt.s32.totalorder %s545_s18, 3 }
   0x4   : > { %p188_p2 = pnand %p491_p0, %p187_p1 }
   0x5   : > { %p215_p3 = scmp.lt.s32.totalorder (!%p188_p2), %s487_s19, 1  ;;  %v547_v6 = vmov (!%p188_p2), 0.0|0.0   ;;  %v235_v7 = vld [vmem:[%s620_s1] sm:$0xff] (!%p188_p2)  ;;  %v236_v8 = vld [vmem:[%s620_s1 + $0x8] sm:$0xff] (!%p188_p2)  ;;  %vm548_vm0 = vmmov (!%p188_p2), 0   ;;  %v549_v10 = vmov (!%p188_p2), 0.0   ;;  %v240_v11 = vlaneseq (!%p188_p2) }
   0x6   : > { %191 = sbr.rel (%p188_p2) target bundleno = 748 (0x2ec), region = 40  ;;  %521 = vmatprep.subr.bf16.mxu0 (!%p188_p2), %v547_v6  ;;  %v522_v9 = vpack.c.bf16 (!%p188_p2), %v236_v8, %v235_v7  ;;  %513 = vmatprep.mubr.msk.f32.mxu0 (!%p188_p2), %vm548_vm0, %v549_v10  ;;  %vm251_vm1 = vcmask (!%p188_p2), 130112   ;;  %vm253_vm2 = vcmask (!%p188_p2), 130048   ;;  %v327_v22 = vld [vmem:[%s622_s3] sm:$0xf] (!%p188_p2)  ;;  %vm333_vm3 = vcmask (!%p188_p2), 1043456  }
   0x7   : > { %516 = vmatprep.subr.mxu1 (!%p188_p2), %v549_v10  ;;  %518 = vmatprep.mubr.msk.f32.mxu1 (!%p188_p2), %vm548_vm0, %v549_v10  ;;  %v241_v12 = vand.u32 (!%p188_p2), 127, %v240_v11  ;;  %v243_v13 = vshrl.u32 (!%p188_p2), %v240_v11, 7  ;;  %v237_v23 = vld [vmem:[%s621_s2] sm:$0x1] (!%p188_p2)  ;;  %vm329_vm4 = vcmask (!%p188_p2), 31744  }
   0x8   : > { %523 = vmatpush3.bf16.msra.mxu0 (!%p188_p2), %v522_v9  ;;  %517 = vmatpush3.msk.msra.mxu1 (!%p188_p2), %vm333_vm3, %v327_v22  ;;  %v328_v28 = vld [vmem:[%s623_s4] sm:$0x1] (!%p188_p2) }
   0x9   : > { %v246_v14 = vadd.s32 (!%p188_p2), 4294967288, %v241_v12  ;;  %v244_v16 = vsub.s32 (!%p188_p2), %v241_v12, %v243_v13  ;;  %v415_v35 = vsub.s32 (!%p188_p2), 0, %v243_v13 }
   0xb   : > { %v249_v17 = vsub.s32 (!%p188_p2), %v246_v14, %v243_v13 }
   0xd   : > { %s626_s19 = smov (!%p215_p3, %s487_s19), 1 }
   0xe   : > { %s502_s20 = sshll.u32 %s626_s19, 5 }
   0xf   : > { %s219_s23 = scalar_lea.vmem %s619_s0, %s502_s20  ;;  %s224_s11 = scalar_lea.vmem %s624_s5, %s502_s20 }
  0x10   : > { %v225_v0 = vld [vmem:[%s219_s23] sm:$0xff]  ;;  %v226_v1 = vld [vmem:[%s219_s23 + $0x8] sm:$0xff]  ;;  %v227_v2 = vld [vmem:[%s219_s23 + $0x10] sm:$0xff] }
  0x11   : > { %v229_v3 = vadd.f32 %v226_v1, %v225_v0  ;;  %v228_v4 = vld [vmem:[%s219_s23 + $0x18] sm:$0xff] }
  0x12   : > { %v232_v5 = vadd.f32 %v228_v4, %v227_v2 }
  0x13   : > { %230 = vadd.xlane.f32.xlu0 %v229_v3 }
  0x17   : > { %233 = vadd.xlane.f32.xlu0 %v232_v5 }
  0xa0   : > { %v231_v15 = vpop.xlane.xlu0 %230 }
  0xa1   : > { %v245_v19 = vrot.slane %v231_v15, %v244_v16 }
  0xa4   : > { %v234_v18 = vpop.xlane.xlu0 %233 }
  0xa5   : > { %v250_v20 = vrot.slane %v234_v18, %v249_v17 }
  0xa7   : > { %v252_v21 = vsel %vm251_vm1, %v250_v20, %v245_v19 }
  0xa8   : > { %514 = vmatmul.mubr.msk.f32.vlgmr.msra.gmra.mrb[0].mxu0 %vm253_vm2, %v252_v21 }
 0x17b   : > { %v322_v24 = vpop.f32.mrb[0].mxu0 }
 0x17c   : > { %v323_v25 = vadd.f32 %v322_v24, %v237_v23  ;;  %v515_v26 = vpop.f32.mrb[1].mxu0 }
 0x17e   : > { %v326_v27 = vmax.f32 %v323_v25, 0.0 }
 0x180   : > { %519 = vmatmul.mubr.msk.f32.vlgmr.msra.gmra.mrb[0].mxu1 %vm329_vm4, %v326_v27 }
 0x253   : > { %v403_v29 = vpop.f32.mrb[0].mxu1 }
 0x254   : > { %v404_v30 = vadd.f32 %v403_v29, %v328_v28  ;;  %v520_v31 = vpop.f32.mrb[1].mxu1 }
 0x256   : > { %v499_v32 = vmul.f32 -1.442695, %v404_v30 }
 0x258   : > { %535 = vpow2.f32 %v499_v32 }
 0x262   : > { %v536_v33 = vpop.eup %535 }
 0x263   : > { %v410_v34 = vadd.f32 1.0, %v536_v33 }
 0x265   : > { %537 = vrcp.f32 %v410_v34 }
 0x26f   : > { %v538_v36 = vpop.eup %537 }
 0x270   : > { %v416_v37 = vrot.slane %v538_v36, %v415_v35 }
 0x272   : > { %418 = vbcast.lane.b32.xlu1 %v416_v37, 256 }
 0x276   : > { %422 = vbcast.lane.b32.xlu1 %v416_v37, 264 }
 0x2e4   : > { %v419_v38 = vpop.permute.xlu1 %418 }
 0x2e5   : > { %v424_v39 = vmul.f32 %v419_v38, %v225_v0  ;;  %v425_v40 = vmul.f32 %v419_v38, %v226_v1 }
 0x2e7   : > { %428 = vst [vmem:[%s224_s11] sm:$0xff] %v424_v39  ;;  %429 = vst [vmem:[%s224_s11 + $0x8] sm:$0xff] %v425_v40 }
 0x2e8   : > { %v423_v41 = vpop.permute.xlu1 %422 }
 0x2e9   : > { %v426_v42 = vmul.f32 %v423_v41, %v227_v2  ;;  %v427_v43 = vmul.f32 %v423_v41, %v228_v4 }
 0x2eb   : > { %430 = vst [vmem:[%s224_s11 + $0x10] sm:$0xff] %v426_v42  ;;  %431 = vst [vmem:[%s224_s11 + $0x18] sm:$0xff] %v427_v43 }
 0x2ec PF: > { %s15_s18 = sadd.s32 1, %s545_s18  }
 0x2ed   : > { %p12_p4 = scmp.ge.s32.totalorder %s15_s18, 4  }
 0x2ef   :  { %14 = sbr.rel (!%p12_p4) target bundleno = 1 (0x1), region = 70 }

</bundles_post_ra>
